<compile_context>
chip_gen: v7x
topology: tpu7x:2x2x1
jax: 0.10.0
libtpu: 0.0.40
codegen_flags: <defaults>
</compile_context>

<pallas_src>
import functools
import math

import jax
import jax.numpy as jnp
from jax.experimental import pallas as pl
from jax.experimental.pallas import tpu as pltpu

_EPS = 1e-5  # PyTorch BatchNorm2d default


def _shift_lanes(x, off):
    """y[:, p] = x[:, p + off] along the flattened spatial (lane) axis, zero-filled
    outside [0, L).  `off` is a static Python int."""
    if off == 0:
        return x
    c = x.shape[0]
    if off > 0:
        pad = jnp.zeros((c, off), x.dtype)
        return jnp.concatenate([x[:, off:], pad], axis=1)
    pad = jnp.zeros((c, -off), x.dtype)
    return jnp.concatenate([pad, x[:, :off]], axis=1)


def _ghost_kernel(x_ref, w1_ref, b1_ref, w2_ref, b2_ref, o_ref, *, H, W):
    L = H * W
    oup = o_ref.shape[1]

    # ---- primary 1x1 conv (+ folded-BN shift + ReLU) -----------------------------
    # (Cinit, Cin) @ (Cin, H*W): spatial stays on the lane axis, so the result is
    # lane-dense even for tiny channel counts.
    x = x_ref[0].astype(jnp.float32)                                    # (Cin, L)
    y1 = jnp.dot(w1_ref[...], x, preferred_element_type=jnp.float32)    # (Cinit, L)
    x1 = jnp.maximum(y1 + b1_ref[...], 0.0)                             # BN scale pre-folded

    # ---- depthwise 3x3 (+ folded-BN shift + ReLU) on the VMEM-resident x1 --------
    # Zero-filled lane shifts replace the padded scratch image; only the left/right
    # column taps need masking (rows running off the image are zero-filled by the
    # shift itself).  Masks are hoisted out of the 9-tap loop.
    col = jax.lax.broadcasted_iota(jnp.int32, (1, L), 1) % W
    not_first_col = col >= 1        # valid positions for a dx = -1 tap
    not_last_col = col <= W - 2     # valid positions for a dx = +1 tap

    w2 = w2_ref[...]                # (Cnew, 9), BN scale pre-folded
    acc = jnp.zeros_like(x1)        # Cnew == Cinit (ratio == 2 -> pure depthwise)
    for dy in range(3):
        for dx in range(3):
            t = _shift_lanes(x1, (dy - 1) * W + (dx - 1))
            if dx == 0:
                t = jnp.where(not_first_col, t, 0.0)
            elif dx == 2:
                t = jnp.where(not_last_col, t, 0.0)
            k = dy * 3 + dx
            acc = acc + t * w2[:, k:k + 1]
    x2 = jnp.maximum(acc + b2_ref[...], 0.0)

    # ---- channel concat + [:oup] slice, single dense store (lane dim = H*W) ------
    o_ref[0] = jnp.concatenate([x1, x2], axis=0)[:oup].astype(o_ref.dtype)


def ghost_conv2d_forward(x_nchw, params, oup):
    N, Cin, H, W = x_nchw.shape
    Cinit = params["conv1_w"].shape[0]
    Cnew = params["conv2_w"].shape[0]
    assert Cnew == Cinit, "only ratio=2 (pure depthwise cheap op) is supported"
    assert oup <= Cinit + Cnew
    L = H * W
    assert L % 128 == 0, "flattened spatial dim should be a multiple of 128 lanes"

    # ---- eval-mode BN folded into the conv weights (scale) + per-channel shifts ----
    s1 = params["bn1_gamma"] / jnp.sqrt(params["bn1_var"] + _EPS)
    w1 = (params["conv1_w"] * s1[:, None]).astype(jnp.float32)                 # (Cinit, Cin)
    b1 = ((params["conv1_bias"] - params["bn1_mean"]) * s1
          + params["bn1_beta"]).astype(jnp.float32)[:, None]                   # (Cinit, 1)

    s2 = params["bn2_gamma"] / jnp.sqrt(params["bn2_var"] + _EPS)
    w2 = (params["conv2_w"] * s2[:, None, None]).reshape(Cnew, 9).astype(jnp.float32)
    b2 = ((params["conv2_bias"] - params["bn2_mean"]) * s2
          + params["bn2_beta"]).astype(jnp.float32)[:, None]                   # (Cnew, 1)

    x_flat = x_nchw.reshape(N, Cin, L)   # free reshape: spatial -> lane axis

    kernel = functools.partial(_ghost_kernel, H=H, W=W)
    out_flat = pl.pallas_call(
        kernel,
        out_shape=jax.ShapeDtypeStruct((N, oup, L), x_nchw.dtype),
        grid=(N,),
        in_specs=[
            pl.BlockSpec((1, Cin, L), lambda n: (n, 0, 0)),
            pl.BlockSpec((Cinit, Cin), lambda n: (0, 0)),
            pl.BlockSpec((Cinit, 1), lambda n: (0, 0)),
            pl.BlockSpec((Cnew, 9), lambda n: (0, 0)),
            pl.BlockSpec((Cnew, 1), lambda n: (0, 0)),
        ],
        out_specs=pl.BlockSpec((1, oup, L), lambda n: (n, 0, 0)),
        compiler_params=pltpu.CompilerParams(
            dimension_semantics=("parallel",),      # batch axis shards across TCs (v7x)
            vmem_limit_bytes=32 * 1024 * 1024,      # explicit budget; tiles here are tiny
        ),
    )(x_flat, w1, b1, w2, b2)
    return out_flat.reshape(N, oup, H, W)


# ----------------------------------------------------------------------------
# Pure-JAX reference (lax conv, NCHW) for correctness checking
# ----------------------------------------------------------------------------
def _reference(x, p, oup):
    w1 = p["conv1_w"][:, :, None, None]                       # OIHW (Cinit, Cin, 1, 1)
    y1 = jax.lax.conv_general_dilated(
        x, w1, (1, 1), "VALID", dimension_numbers=("NCHW", "OIHW", "NCHW"))
    y1 = y1 + p["conv1_bias"][None, :, None, None]
    y1 = ((y1 - p["bn1_mean"][None, :, None, None])
          / jnp.sqrt(p["bn1_var"] + _EPS)[None, :, None, None]
          * p["bn1_gamma"][None, :, None, None] + p["bn1_beta"][None, :, None, None])
    x1 = jnp.maximum(y1, 0.0)

    Cinit = x1.shape[1]
    w2 = p["conv2_w"][:, None, :, :]                           # (Cnew, 1, 3, 3)
    y2 = jax.lax.conv_general_dilated(
        x1, w2, (1, 1), ((1, 1), (1, 1)),
        dimension_numbers=("NCHW", "OIHW", "NCHW"), feature_group_count=Cinit)
    y2 = y2 + p["conv2_bias"][None, :, None, None]
    y2 = ((y2 - p["bn2_mean"][None, :, None, None])
          / jnp.sqrt(p["bn2_var"] + _EPS)[None, :, None, None]
          * p["bn2_gamma"][None, :, None, None] + p["bn2_beta"][None, :, None, None])
    x2 = jnp.maximum(y2, 0.0)
    return jnp.concatenate([x1, x2], axis=1)[:, :oup]


if __name__ == "__main__":
    # GhostConv2D(inp=4, oup=7, kernel_size=1, ratio=2, dw_size=3)
    inp, oup, ratio = 4, 7, 2
    init_channels = math.ceil(oup / ratio)          # 4
    new_channels = init_channels * (ratio - 1)      # 4
    N, H, W = 2, 16, 16

    keys = jax.random.split(jax.random.PRNGKey(0), 13)
    x = jax.random.normal(keys[0], (N, inp, H, W), jnp.float32)

    params = {
        # primary 1x1 conv, PyTorch-style (out, in); bias (out,)
        "conv1_w": 0.2 * jax.random.normal(keys[1], (init_channels, inp), jnp.float32),
        "conv1_bias": 0.1 * jax.random.normal(keys[2], (init_channels,), jnp.float32),
        "bn1_gamma": jax.random.uniform(keys[3], (init_channels,), minval=0.5, maxval=1.5),
        "bn1_beta": 0.1 * jax.random.normal(keys[4], (init_channels,), jnp.float32),
        "bn1_mean": 0.1 * jax.random.normal(keys[5], (init_channels,), jnp.float32),
        "bn1_var": jax.random.uniform(keys[6], (init_channels,), minval=0.5, maxval=1.5),
        # cheap (depthwise) 3x3 conv: (out, 3, 3); bias (out,)
        "conv2_w": 0.2 * jax.random.normal(keys[7], (new_channels, 3, 3), jnp.float32),
        "conv2_bias": 0.1 * jax.random.normal(keys[8], (new_channels,), jnp.float32),
        "bn2_gamma": jax.random.uniform(keys[9], (new_channels,), minval=0.5, maxval=1.5),
        "bn2_beta": 0.1 * jax.random.normal(keys[10], (new_channels,), jnp.float32),
        "bn2_mean": 0.1 * jax.random.normal(keys[11], (new_channels,), jnp.float32),
        "bn2_var": jax.random.uniform(keys[12], (new_channels,), minval=0.5, maxval=1.5),
    }

    fwd = jax.jit(lambda xx, pp: ghost_conv2d_forward(xx, pp, oup))
    out = jax.block_until_ready(fwd(x, params))
    ref = jax.block_until_ready(_reference(x, params, oup))

    assert out.shape == (N, oup, H, W), out.shape
    max_err = float(jnp.max(jnp.abs(out - ref)))
    assert jnp.allclose(out, ref, atol=1e-4, rtol=1e-4), max_err

    print("KERNEL_OK")
</pallas_src>

<mosaic_0001>
module attributes {stable_mosaic.version = 11 : i64} {
  func.func @_ghost_kernel(%arg0: i32, %arg1: memref<1x4x256xf32, #tpu.memory_space<vmem>>, %arg2: memref<4x4xf32, #tpu.memory_space<vmem>>, %arg3: memref<4x1xf32, #tpu.memory_space<vmem>>, %arg4: memref<4x9xf32, #tpu.memory_space<vmem>>, %arg5: memref<4x1xf32, #tpu.memory_space<vmem>>, %arg6: memref<1x7x256xf32, #tpu.memory_space<vmem>>) attributes {dimension_semantics = [#tpu.dimension_semantics<parallel>], iteration_bounds = array<i64: 2>, scalar_prefetch = 0 : i64, scratch_operands = 0 : i64, tpu.core_type = #tpu.core_type<tc>, window_params = [{transform_indices = @transform_0, window_bounds = array<i64: 1, 4, 256>}, {pipeline_mode = #tpu.pipeline_mode<synchronous>, transform_indices = @transform_1, window_bounds = array<i64: 4, 4>}, {pipeline_mode = #tpu.pipeline_mode<synchronous>, transform_indices = @transform_2, window_bounds = array<i64: 4, 1>}, {pipeline_mode = #tpu.pipeline_mode<synchronous>, transform_indices = @transform_3, window_bounds = array<i64: 4, 9>}, {pipeline_mode = #tpu.pipeline_mode<synchronous>, transform_indices = @transform_4, window_bounds = array<i64: 4, 1>}, {transform_indices = @transform_5, window_bounds = array<i64: 1, 7, 256>}]} {
    %c0 = arith.constant 0 : index
    %c0_0 = arith.constant 0 : index
    %c0_1 = arith.constant 0 : index
    %0 = vector.load %arg1[%c0, %c0_0, %c0_1] : memref<1x4x256xf32, #tpu.memory_space<vmem>>, vector<1x4x256xf32>
    %1 = vector.shape_cast %0 : vector<1x4x256xf32> to vector<4x256xf32>
    %c0_2 = arith.constant 0 : index
    %c0_3 = arith.constant 0 : index
    %2 = vector.load %arg2[%c0_2, %c0_3] : memref<4x4xf32, #tpu.memory_space<vmem>>, vector<4x4xf32>
    %cst = arith.constant dense<0.000000e+00> : vector<4x256xf32>
    %3 = tpu.matmul %2, %1, %cst {dimension_numbers = #tpu.dot_dimension_numbers<[1], [0], [0], [1], [0, 0, 1, 1], [], []>} : vector<4x4xf32>, vector<4x256xf32>, vector<4x256xf32> -> vector<4x256xf32>
    %c0_4 = arith.constant 0 : index
    %c0_5 = arith.constant 0 : index
    %4 = vector.load %arg3[%c0_4, %c0_5] : memref<4x1xf32, #tpu.memory_space<vmem>>, vector<4x1xf32>
    %5 = vector.broadcast %4 : vector<4x1xf32> to vector<4x256xf32>
    %6 = arith.addf %3, %5 : vector<4x256xf32>
    %cst_6 = arith.constant 0.000000e+00 : f32
    %7 = vector.broadcast %cst_6 : f32 to vector<4x256xf32>
    %8 = arith.maximumf %6, %7 : vector<4x256xf32>
    %9 = tpu.iota {dimensions = array<i32: 1>} : vector<1x256xi32>
    %c16_i32 = arith.constant 16 : i32
    %c0_i32 = arith.constant 0 : i32
    %10 = arith.cmpi eq, %c16_i32, %c0_i32 : i32
    %c1_i32 = arith.constant 1 : i32
    %11 = arith.select %10, %c1_i32, %c16_i32 : i32
    %12 = vector.broadcast %11 : i32 to vector<1x256xi32>
    %13 = arith.remsi %9, %12 : vector<1x256xi32>
    %c0_i32_7 = arith.constant 0 : i32
    %14 = vector.broadcast %c0_i32_7 : i32 to vector<1x256xi32>
    %15 = arith.cmpi ne, %13, %14 : vector<1x256xi32>
    %c0_i32_8 = arith.constant 0 : i32
    %16 = vector.broadcast %c0_i32_8 : i32 to vector<1x256xi32>
    %17 = arith.cmpi slt, %13, %16 : vector<1x256xi32>
    %c0_i32_9 = arith.constant 0 : i32
    %18 = arith.cmpi slt, %11, %c0_i32_9 : i32
    %19 = vector.broadcast %18 : i1 to vector<1x256xi1>
    %20 = vector.broadcast %19 : vector<1x256xi1> to vector<1x256xi1>
    %21 = arith.xori %17, %20 : vector<1x256xi1>
    %22 = arith.andi %21, %15 : vector<1x256xi1>
    %23 = vector.broadcast %11 : i32 to vector<1x256xi32>
    %24 = arith.addi %13, %23 : vector<1x256xi32>
    %25 = arith.select %22, %24, %13 : vector<1x256xi1>, vector<1x256xi32>
    %c1_i32_10 = arith.constant 1 : i32
    %26 = vector.broadcast %c1_i32_10 : i32 to vector<1x256xi32>
    %27 = arith.cmpi sge, %25, %26 : vector<1x256xi32>
    %c14_i32 = arith.constant 14 : i32
    %28 = vector.broadcast %c14_i32 : i32 to vector<1x256xi32>
    %29 = arith.cmpi sle, %25, %28 : vector<1x256xi32>
    %c0_11 = arith.constant 0 : index
    %c0_12 = arith.constant 0 : index
    %30 = vector.load %arg4[%c0_11, %c0_12] : memref<4x9xf32, #tpu.memory_space<vmem>>, vector<4x9xf32>
    %cst_13 = arith.constant 0.000000e+00 : f32
    %31 = vector.broadcast %cst_13 : f32 to vector<4x256xf32>
    %cst_14 = arith.constant 0.000000e+00 : f32
    %32 = vector.broadcast %cst_14 : f32 to vector<4x17xf32>
    %33 = vector.extract_strided_slice %8 {offsets = [0, 0], sizes = [4, 239], strides = [1, 1]} : vector<4x256xf32> to vector<4x239xf32>
    %34 = tpu.concatenate %32, %33 in 1 : vector<4x17xf32>, vector<4x239xf32> -> vector<4x256xf32>
    %cst_15 = arith.constant 0.000000e+00 : f32
    %35 = vector.shape_cast %27 : vector<1x256xi1> to vector<1x256xi1>
    %36 = vector.broadcast %35 : vector<1x256xi1> to vector<4x256xi1>
    %37 = vector.broadcast %cst_15 : f32 to vector<4x256xf32>
    %38 = arith.select %36, %34, %37 : vector<4x256xi1>, vector<4x256xf32>
    %39 = vector.extract_strided_slice %30 {offsets = [0, 0], sizes = [4, 1], strides = [1, 1]} : vector<4x9xf32> to vector<4x1xf32>
    %40 = vector.broadcast %39 : vector<4x1xf32> to vector<4x256xf32>
    %41 = arith.mulf %38, %40 : vector<4x256xf32>
    %42 = arith.addf %31, %41 : vector<4x256xf32>
    %cst_16 = arith.constant 0.000000e+00 : f32
    %43 = vector.broadcast %cst_16 : f32 to vector<4x16xf32>
    %44 = vector.extract_strided_slice %8 {offsets = [0, 0], sizes = [4, 240], strides = [1, 1]} : vector<4x256xf32> to vector<4x240xf32>
    %45 = tpu.concatenate %43, %44 in 1 : vector<4x16xf32>, vector<4x240xf32> -> vector<4x256xf32>
    %46 = vector.extract_strided_slice %30 {offsets = [0, 1], sizes = [4, 1], strides = [1, 1]} : vector<4x9xf32> to vector<4x1xf32>
    %47 = vector.broadcast %46 : vector<4x1xf32> to vector<4x256xf32>
    %48 = arith.mulf %45, %47 : vector<4x256xf32>
    %49 = arith.addf %42, %48 : vector<4x256xf32>
    %cst_17 = arith.constant 0.000000e+00 : f32
    %50 = vector.broadcast %cst_17 : f32 to vector<4x15xf32>
    %51 = vector.extract_strided_slice %8 {offsets = [0, 0], sizes = [4, 241], strides = [1, 1]} : vector<4x256xf32> to vector<4x241xf32>
    %52 = tpu.concatenate %50, %51 in 1 : vector<4x15xf32>, vector<4x241xf32> -> vector<4x256xf32>
    %cst_18 = arith.constant 0.000000e+00 : f32
    %53 = vector.shape_cast %29 : vector<1x256xi1> to vector<1x256xi1>
    %54 = vector.broadcast %53 : vector<1x256xi1> to vector<4x256xi1>
    %55 = vector.broadcast %cst_18 : f32 to vector<4x256xf32>
    %56 = arith.select %54, %52, %55 : vector<4x256xi1>, vector<4x256xf32>
    %57 = vector.extract_strided_slice %30 {offsets = [0, 2], sizes = [4, 1], strides = [1, 1]} : vector<4x9xf32> to vector<4x1xf32>
    %58 = vector.broadcast %57 : vector<4x1xf32> to vector<4x256xf32>
    %59 = arith.mulf %56, %58 : vector<4x256xf32>
    %60 = arith.addf %49, %59 : vector<4x256xf32>
    %cst_19 = arith.constant 0.000000e+00 : f32
    %61 = vector.broadcast %cst_19 : f32 to vector<4x1xf32>
    %62 = vector.extract_strided_slice %8 {offsets = [0, 0], sizes = [4, 255], strides = [1, 1]} : vector<4x256xf32> to vector<4x255xf32>
    %63 = tpu.concatenate %61, %62 in 1 : vector<4x1xf32>, vector<4x255xf32> -> vector<4x256xf32>
    %cst_20 = arith.constant 0.000000e+00 : f32
    %64 = vector.shape_cast %27 : vector<1x256xi1> to vector<1x256xi1>
    %65 = vector.broadcast %64 : vector<1x256xi1> to vector<4x256xi1>
    %66 = vector.broadcast %cst_20 : f32 to vector<4x256xf32>
    %67 = arith.select %65, %63, %66 : vector<4x256xi1>, vector<4x256xf32>
    %68 = vector.extract_strided_slice %30 {offsets = [0, 3], sizes = [4, 1], strides = [1, 1]} : vector<4x9xf32> to vector<4x1xf32>
    %69 = vector.broadcast %68 : vector<4x1xf32> to vector<4x256xf32>
    %70 = arith.mulf %67, %69 : vector<4x256xf32>
    %71 = arith.addf %60, %70 : vector<4x256xf32>
    %72 = vector.extract_strided_slice %30 {offsets = [0, 4], sizes = [4, 1], strides = [1, 1]} : vector<4x9xf32> to vector<4x1xf32>
    %73 = vector.broadcast %72 : vector<4x1xf32> to vector<4x256xf32>
    %74 = arith.mulf %8, %73 : vector<4x256xf32>
    %75 = arith.addf %71, %74 : vector<4x256xf32>
    %cst_21 = arith.constant 0.000000e+00 : f32
    %76 = vector.broadcast %cst_21 : f32 to vector<4x1xf32>
    %77 = vector.extract_strided_slice %8 {offsets = [0, 1], sizes = [4, 255], strides = [1, 1]} : vector<4x256xf32> to vector<4x255xf32>
    %78 = tpu.concatenate %77, %76 in 1 : vector<4x255xf32>, vector<4x1xf32> -> vector<4x256xf32>
    %cst_22 = arith.constant 0.000000e+00 : f32
    %79 = vector.shape_cast %29 : vector<1x256xi1> to vector<1x256xi1>
    %80 = vector.broadcast %79 : vector<1x256xi1> to vector<4x256xi1>
    %81 = vector.broadcast %cst_22 : f32 to vector<4x256xf32>
    %82 = arith.select %80, %78, %81 : vector<4x256xi1>, vector<4x256xf32>
    %83 = vector.extract_strided_slice %30 {offsets = [0, 5], sizes = [4, 1], strides = [1, 1]} : vector<4x9xf32> to vector<4x1xf32>
    %84 = vector.broadcast %83 : vector<4x1xf32> to vector<4x256xf32>
    %85 = arith.mulf %82, %84 : vector<4x256xf32>
    %86 = arith.addf %75, %85 : vector<4x256xf32>
    %cst_23 = arith.constant 0.000000e+00 : f32
    %87 = vector.broadcast %cst_23 : f32 to vector<4x15xf32>
    %88 = vector.extract_strided_slice %8 {offsets = [0, 15], sizes = [4, 241], strides = [1, 1]} : vector<4x256xf32> to vector<4x241xf32>
    %89 = tpu.concatenate %88, %87 in 1 : vector<4x241xf32>, vector<4x15xf32> -> vector<4x256xf32>
    %cst_24 = arith.constant 0.000000e+00 : f32
    %90 = vector.shape_cast %27 : vector<1x256xi1> to vector<1x256xi1>
    %91 = vector.broadcast %90 : vector<1x256xi1> to vector<4x256xi1>
    %92 = vector.broadcast %cst_24 : f32 to vector<4x256xf32>
    %93 = arith.select %91, %89, %92 : vector<4x256xi1>, vector<4x256xf32>
    %94 = vector.extract_strided_slice %30 {offsets = [0, 6], sizes = [4, 1], strides = [1, 1]} : vector<4x9xf32> to vector<4x1xf32>
    %95 = vector.broadcast %94 : vector<4x1xf32> to vector<4x256xf32>
    %96 = arith.mulf %93, %95 : vector<4x256xf32>
    %97 = arith.addf %86, %96 : vector<4x256xf32>
    %cst_25 = arith.constant 0.000000e+00 : f32
    %98 = vector.broadcast %cst_25 : f32 to vector<4x16xf32>
    %99 = vector.extract_strided_slice %8 {offsets = [0, 16], sizes = [4, 240], strides = [1, 1]} : vector<4x256xf32> to vector<4x240xf32>
    %100 = tpu.concatenate %99, %98 in 1 : vector<4x240xf32>, vector<4x16xf32> -> vector<4x256xf32>
    %101 = vector.extract_strided_slice %30 {offsets = [0, 7], sizes = [4, 1], strides = [1, 1]} : vector<4x9xf32> to vector<4x1xf32>
    %102 = vector.broadcast %101 : vector<4x1xf32> to vector<4x256xf32>
    %103 = arith.mulf %100, %102 : vector<4x256xf32>
    %104 = arith.addf %97, %103 : vector<4x256xf32>
    %cst_26 = arith.constant 0.000000e+00 : f32
    %105 = vector.broadcast %cst_26 : f32 to vector<4x17xf32>
    %106 = vector.extract_strided_slice %8 {offsets = [0, 17], sizes = [4, 239], strides = [1, 1]} : vector<4x256xf32> to vector<4x239xf32>
    %107 = tpu.concatenate %106, %105 in 1 : vector<4x239xf32>, vector<4x17xf32> -> vector<4x256xf32>
    %cst_27 = arith.constant 0.000000e+00 : f32
    %108 = vector.shape_cast %29 : vector<1x256xi1> to vector<1x256xi1>
    %109 = vector.broadcast %108 : vector<1x256xi1> to vector<4x256xi1>
    %110 = vector.broadcast %cst_27 : f32 to vector<4x256xf32>
    %111 = arith.select %109, %107, %110 : vector<4x256xi1>, vector<4x256xf32>
    %112 = vector.extract_strided_slice %30 {offsets = [0, 8], sizes = [4, 1], strides = [1, 1]} : vector<4x9xf32> to vector<4x1xf32>
    %113 = vector.broadcast %112 : vector<4x1xf32> to vector<4x256xf32>
    %114 = arith.mulf %111, %113 : vector<4x256xf32>
    %115 = arith.addf %104, %114 : vector<4x256xf32>
    %c0_28 = arith.constant 0 : index
    %c0_29 = arith.constant 0 : index
    %116 = vector.load %arg5[%c0_28, %c0_29] : memref<4x1xf32, #tpu.memory_space<vmem>>, vector<4x1xf32>
    %117 = vector.broadcast %116 : vector<4x1xf32> to vector<4x256xf32>
    %118 = arith.addf %115, %117 : vector<4x256xf32>
    %cst_30 = arith.constant 0.000000e+00 : f32
    %119 = vector.broadcast %cst_30 : f32 to vector<4x256xf32>
    %120 = arith.maximumf %118, %119 : vector<4x256xf32>
    %121 = tpu.concatenate %8, %120 in 0 : vector<4x256xf32>, vector<4x256xf32> -> vector<8x256xf32>
    %122 = vector.extract_strided_slice %121 {offsets = [0, 0], sizes = [7, 256], strides = [1, 1]} : vector<8x256xf32> to vector<7x256xf32>
    %c0_31 = arith.constant 0 : index
    %c0_32 = arith.constant 0 : index
    %c0_33 = arith.constant 0 : index
    %123 = vector.load %arg6[%c0_31, %c0_32, %c0_33] : memref<1x7x256xf32, #tpu.memory_space<vmem>>, vector<1x7x256xf32>
    %124 = vector.shape_cast %123 : vector<1x7x256xf32> to vector<7x256xf32>
    %125 = vector.shape_cast %122 : vector<7x256xf32> to vector<1x7x256xf32>
    tpu.vector_store %arg6[%c0_31, %c0_32, %c0_33], %125 {strides = array<i32>} : memref<1x7x256xf32, #tpu.memory_space<vmem>>, vector<1x7x256xf32>,
    return
  }
  func.func @transform_0(%arg0: i32) -> (i32, i32, i32) {
    %c0_i32 = arith.constant 0 : i32
    %c0_i32_0 = arith.constant 0 : i32
    %c0_i32_1 = arith.constant 0 : i32
    return %arg0, %c0_i32, %c0_i32_0 : i32, i32, i32
  }
  func.func @transform_1(%arg0: i32) -> (i32, i32) {
    %c0_i32 = arith.constant 0 : i32
    %c0_i32_0 = arith.constant 0 : i32
    %c0_i32_1 = arith.constant 0 : i32
    return %c0_i32, %c0_i32_0 : i32, i32
  }
  func.func @transform_2(%arg0: i32) -> (i32, i32) {
    %c0_i32 = arith.constant 0 : i32
    %c0_i32_0 = arith.constant 0 : i32
    %c0_i32_1 = arith.constant 0 : i32
    return %c0_i32, %c0_i32_0 : i32, i32
  }
  func.func @transform_3(%arg0: i32) -> (i32, i32) {
    %c0_i32 = arith.constant 0 : i32
    %c0_i32_0 = arith.constant 0 : i32
    %c0_i32_1 = arith.constant 0 : i32
    return %c0_i32, %c0_i32_0 : i32, i32
  }
  func.func @transform_4(%arg0: i32) -> (i32, i32) {
    %c0_i32 = arith.constant 0 : i32
    %c0_i32_0 = arith.constant 0 : i32
    %c0_i32_1 = arith.constant 0 : i32
    return %c0_i32, %c0_i32_0 : i32, i32
  }
  func.func @transform_5(%arg0: i32) -> (i32, i32, i32) {
    %c0_i32 = arith.constant 0 : i32
    %c0_i32_0 = arith.constant 0 : i32
    %c0_i32_1 = arith.constant 0 : i32
    return %arg0, %c0_i32, %c0_i32_0 : i32, i32, i32
  }
}

</mosaic_0001>

<bundles_post_ra>
// kernel: _lambda_.1
= control target key start
LH: loop header
LB: loop body
LE: loop exit
PB: predicated region body
PF: predicated region fallthrough
CT: control target
= control target key end

     0   :  { %s700_s18 = smov 0   ;;  %s827_s0 = inlined_call_operand.vmem [shape: f32[2,4,256], index: 0, kind: input, shape index: {}]   ;;  %s828_s1 = inlined_call_operand.vmem [shape: f32[4,4], index: 1, kind: input, shape index: {}]   ;;  %s829_s2 = inlined_call_operand.vmem [shape: f32[4,1], index: 2, kind: input, shape index: {}]   ;;  %s830_s3 = inlined_call_operand.vmem [shape: f32[4,9], index: 3, kind: input, shape index: {}]   ;;  %s831_s4 = inlined_call_operand.vmem [shape: f32[4,1], index: 4, kind: input, shape index: {}]   ;;  %s832_s5 = inlined_call_operand.vmem [shape: f32[2,7,256], index: 5, kind: output, shape index: {}]  }
   0x1 LB: > { %s591_s19 = sadd.s32 4294967295, %s650_s18   ;;  %p595_p0 = scmp.ge.s32.totalorder %s650_s18, 1  ;;  %s650_s18 = sphi %s700_s18, %s15_s18  }
   0x2   : > { %p187_p1 = scmp.lt.s32.totalorder %s650_s18, 3 }
   0x4   : > { %p188_p2 = pnand %p595_p0, %p187_p1 }
   0x5   : > { %p215_p3 = scmp.lt.s32.totalorder (!%p188_p2), %s591_s19, 1  ;;  %v652_v0 = vmov (!%p188_p2), 0.0   ;;  %v227_v1 = vld [vmem:[%s829_s2] sm:$0xf] (!%p188_p2)  ;;  %v653_v2 = vmov (!%p188_p2), 0   ;;  %v654_v4 = vmov (!%p188_p2), 1   ;;  %v317_v33 = vlaneseq (!%p188_p2) }
   0x6   : > { %191 = sbr.rel (%p188_p2) target bundleno = 410 (0x19a), region = 40  ;;  %308 = vmatprep.mubr.f32.mxu0 (!%p188_p2), %v652_v0  ;;  %633 = vset.pattern.permute.xlu0 (!%p188_p2), %v653_v2  ;;  %v348_v3 = vld [vmem:[%s830_s3] sm:$0xf] (!%p188_p2)  ;;  %vm239_vm0 = vcmask (!%p188_p2), 1043456   ;;  %v655_v7 = vmov (!%p188_p2), 3   ;;  %vm235_vm1 = vcmask (!%p188_p2), 31744  }
   0x7   : > { %230 = vperm.xlu0 (!%p188_p2), %633, %v227_v1   ;;  %634 = vset.pattern.permute.xlu1 (!%p188_p2), %v654_v4  ;;  %v226_v8 = vld [vmem:[%s828_s1] sm:$0xf] (!%p188_p2)  ;;  %v656_v9 = vmov (!%p188_p2), 2   ;;  %v657_v10 = vmov (!%p188_p2), 4   ;;  %v658_v11 = vmov (!%p188_p2), 7   ;;  %v659_v12 = vmov (!%p188_p2), 5  }
   0x8   : > { %385 = vperm.xlu1 (!%p188_p2), %634, %v348_v3   ;;  %v660_v13 = vmov (!%p188_p2), 8   ;;  %v661_v14 = vmov (!%p188_p2), 6   ;;  %s662_s30 = smov (!%p188_p2), 16   ;;  %s663_s6 = smov (!%p188_p2), 17   ;;  %v516_v22 = vld [vmem:[%s831_s4] sm:$0xf] (!%p188_p2) }
   0x9   : > { %s664_s7 = smov (!%p188_p2), 113   ;;  %s665_s8 = smov (!%p188_p2), 15   ;;  %v318_v35 = vand.u32 (!%p188_p2), 127, %v317_v33  ;;  %vm355_vm2 = vcmask (!%p188_p2), 138240   ;;  %vm396_vm3 = vcmask (!%p188_p2), 121856   ;;  %vm379_vm4 = vcmask (!%p188_p2), 130048  }
   0xa   : > { %s666_s9 = smov (!%p188_p2), 127   ;;  %s667_s10 = smov (!%p188_p2), 1   ;;  %vm419_vm6 = vcmask (!%p188_p2), 7168   ;;  %vm446_vm10 = vcmask (!%p188_p2), 1039360   ;;  %vm465_vm11 = vcmask (!%p188_p2), 924672   ;;  %vm484_vm12 = vcmask (!%p188_p2), 916480  }
   0xb   : > { %636 = vset.pattern.permute.xlu0 (!%p188_p2), %v655_v7  ;;  %s668_s11 = smov (!%p188_p2), 112   ;;  %s669_s14 = smov (!%p188_p2), 111   ;;  %v324_v38 = vand.u32 (!%p188_p2), 15, %v318_v35  ;;  %v319_v39 = vadd.s32 (!%p188_p2), 128, %v318_v35  ;;  %vm501_vm13 = vcmask (!%p188_p2), 908288  }
   0xc   : > { %427 = vperm.xlu0 (!%p188_p2), %636, %v348_v3   ;;  %635 = vset.pattern.permute.xlu1 (!%p188_p2), %v656_v9 }
   0xd   : > { %s842_s19 = smov (!%p215_p3, %s591_s19), 1  ;;  %408 = vperm.xlu1 %635, %v348_v3   ;;  %vm758_vm5 = vcmp.ge.s32.totalorder %v324_v38, 1  ;;  %v331_v44 = vand.u32 15, %v319_v39  ;;  %vm763_vm7 = vcmp.le.s32.totalorder %v324_v38, 14 }
   0xe   : > { %s605_s24 = sshll.u32 %s842_s19, 3  ;;  %s606_s15 = sshll.u32 %s842_s19, 4 }
   0xf   : > { %s219_s27 = scalar_lea.vmem %s827_s0, %s605_s24  ;;  %vm770_vm8 = vcmp.ge.s32.totalorder %v331_v44, 1  ;;  %vm780_vm9 = vcmp.le.s32.totalorder %v331_v44, 14  ;;  %s224_s20 = scalar_lea.vmem %s832_s5, %s606_s15 }
  0x10   : > { %v225_v5 = vld [vmem:[%s219_s27] sm:$0xff]  ;;  %637 = vset.pattern.permute.xlu0 %v657_v10 }
  0x11   : > { %v234_v6 = vcombine.high %v225_v5, %v225_v5  ;;  %435 = vperm.xlu0 %637, %v348_v3   ;;  %641 = vset.pattern.permute.xlu1 %v658_v11 }
  0x12   : > { %490 = vperm.xlu1 %641, %v348_v3  }
  0x13   : > { %600 = vmatprep.subr.msk.mxu0 %vm239_vm0, %v234_v6 }
  0x14   : > { %601 = vmatpush1.msk.msra.mxu0 %vm239_vm0, %v225_v5 }
  0x15   : > { %602 = vmatmul.mubr.msk.f32.vlgmr.msra.gmra.mrb[0].mxu0 %vm235_vm1, %v226_v8  ;;  %638 = vset.pattern.permute.xlu0 %v659_v12 }
  0x16   : > { %454 = vperm.xlu0 %638, %v348_v3   ;;  %642 = vset.pattern.permute.xlu1 %v660_v13 }
  0x17   : > { %509 = vperm.xlu1 %642, %v348_v3  }
  0x1a   : > { %639 = vset.pattern.permute.xlu0 %v661_v14 }
  0x1b   : > { %473 = vperm.xlu0 %639, %v348_v3  }
  0x1f   : > { %640 = vset.pattern.permute.xlu0 %v653_v2 }
  0x20   : > { %368 = vperm.xlu0 %640, %v348_v3  }
  0x86   : > { %v231_v15 = vpop.permute.xlu0 %230 }
  0x87   : > { %v386_v23 = vpop.permute.xlu1 %385 }
  0x8b   : > { %v428_v26 = vpop.permute.xlu0 %427 }
  0x8c   : > { %v409_v24 = vpop.permute.xlu1 %408 }
  0x90   : > { %v752_v28 = vpop.permute.xlu0 %435 }
  0x91   : > { %v748_v25 = vpop.permute.xlu1 %490 }
  0x95   : > { %v754_v29 = vpop.permute.xlu0 %454 }
  0x96   : > { %v750_v27 = vpop.permute.xlu1 %509 }
  0x9a   : > { %v756_v32 = vpop.permute.xlu0 %473 }
  0x9f   : > { %v369_v36 = vpop.permute.xlu0 %368 }
  0xe8   : > { %v310_v16 = vpop.f32.mrb[0].mxu0 }
  0xe9   : > { %v311_v17 = vadd.f32 %v310_v16, %v231_v15  ;;  %v312_v18 = vpop.f32.mrb[1].mxu0 }
  0xea   : > { %v313_v20 = vadd.f32 %v312_v18, %v231_v15 }
  0xeb   : > { %v725_v19 = vmax.f32 %v311_v17, 0.0 }
  0xec   : > { %v731_v21 = vmax.f32 %v313_v20, 0.0 }
  0xed   : > { %375 = vrot.lane.b32.xlu0 %v725_v19, %s662_s30  ;;  %351 = vrot.lane.b32.xlu1 %v725_v19, %s663_s6  ;;  %v438_v20 = vmul.f32 %v752_v28, %v725_v19 }
  0xf1   : > { %461 = vrot.lane.b32.xlu0 %v725_v19, %s664_s7  ;;  %392 = vrot.lane.b32.xlu1 %v725_v19, %s665_s8 }
  0xf5   : > { %444 = vrot.lane.b32.xlu0 %v731_v21, %s666_s9  ;;  %415 = vrot.lane.b32.xlu1 %v725_v19, %s667_s10 }
  0xf9   : > { %480 = vrot.lane.b32.xlu0 %v725_v19, %s668_s11  ;;  %442 = vrot.lane.b32.xlu1 %v725_v19, %s666_s9 }
  0xfd   : > { %519 = vperm.xlu0 %640, %v516_v22   ;;  %353 = vrot.lane.b32.xlu1 %v731_v21, %s663_s6 }
 0x101   : > { %377 = vrot.lane.b32.xlu1 %v731_v21, %s662_s30 }
 0x105   : > { %394 = vrot.lane.b32.xlu1 %v731_v21, %s665_s8 }
 0x109   : > { %417 = vrot.lane.b32.xlu1 %v731_v21, %s667_s10 }
 0x10d   : > { %497 = vrot.lane.b32.xlu1 %v725_v19, %s669_s14 }
 0x111   : > { %463 = vrot.lane.b32.xlu1 %v731_v21, %s664_s7 }
 0x115   : > { %482 = vrot.lane.b32.xlu1 %v731_v21, %s668_s11 }
 0x119   : > { %499 = vrot.lane.b32.xlu1 %v731_v21, %s669_s14 }
 0x15f   : > { %v352_v30 = vpop.permute.xlu1 %351  ;;  %v376_v41 = vpop.permute.xlu0 %375 }
 0x160   : > { %v359_v43 = vsel %vm355_vm2, 0.0, %v352_v30  ;;  %v383_v48 = vsel %vm379_vm4, 0.0, %v376_v41 }
 0x161   : > { %v364_v49 = vsel %vm758_vm5, %v359_v43, 0.0  ;;  %v388_v55 = vmul.f32 %v386_v23, %v383_v48 }
 0x162   : > { %v371_v56 = vmul.f32 %v369_v36, %v364_v49 }
 0x163   : > { %v393_v31 = vpop.permute.xlu1 %392  ;;  %v462_v57 = vpop.permute.xlu0 %461 }
 0x164   : > { %v400_v46 = vsel %vm396_vm3, 0.0, %v393_v31  ;;  %v390_v4 = vadd.f32 %v388_v55, %v371_v56 }
 0x165   : > { %v405_v54 = vsel %vm763_vm7, %v400_v46, 0.0 }
 0x166   : > { %v411_v0 = vmul.f32 %v409_v24, %v405_v54 }
 0x167   : > { %v416_v34 = vpop.permute.xlu1 %415  ;;  %v445_v10 = vpop.permute.xlu0 %444 }
 0x168   : > { %v423_v52 = vsel %vm419_vm6, 0.0, %v416_v34  ;;  %v413_v9 = vadd.f32 %v411_v0, %v390_v4  ;;  %v450_v17 = vsel %vm446_vm10, %v445_v10, 0.0 }
 0x169   : > { %v424_v61 = vsel %vm758_vm5, %v423_v52, 0.0 }
 0x16a   : > { %v430_v5 = vmul.f32 %v428_v26, %v424_v61 }
 0x16b   : > { %v443_v37 = vpop.permute.xlu1 %442 }
 0x16c   : > { %v447_v12 = vsel %vm446_vm10, %v443_v37, %v445_v10  ;;  %v432_v15 = vadd.f32 %v430_v5, %v413_v9 }
 0x16d   : > { %v451_v22 = vsel %vm763_vm7, %v447_v12, 0.0 }
 0x16f   : > { %v354_v40 = vpop.permute.xlu1 %353 }
 0x170   : > { %v356_v51 = vsel %vm355_vm2, %v352_v30, %v354_v40  ;;  %v440_v30 = vadd.f32 %v438_v20, %v432_v15  ;;  %v481_v40 = vpop.permute.xlu0 %480 }
 0x171   : > { %v365_v58 = vsel %vm770_vm8, %v356_v51, 0.0 }
 0x172   : > { %v372_v2 = vmul.f32 %v369_v36, %v365_v58 }
 0x173   : > { %v378_v47 = vpop.permute.xlu1 %377 }
 0x174   : > { %v380_v53 = vsel %vm379_vm4, %v376_v41, %v378_v47 }
 0x175   : > { %v389_v62 = vmul.f32 %v386_v23, %v380_v53  ;;  %v439_v23 = vmul.f32 %v752_v28, %v731_v21 }
 0x177   : > { %v395_v59 = vpop.permute.xlu1 %394  ;;  %v391_v7 = vadd.f32 %v389_v62, %v372_v2 }
 0x178   : > { %v397_v63 = vsel %vm396_vm3, %v393_v31, %v395_v59 }
 0x179   : > { %v406_v1 = vsel %vm780_vm9, %v397_v63, 0.0 }
 0x17a   : > { %v412_v3 = vmul.f32 %v409_v24, %v406_v1  ;;  %v452_v24 = vsel %vm780_vm9, %v450_v17, 0.0 }
 0x17b   : > { %v418_v6 = vpop.permute.xlu1 %417  ;;  %v458_v38 = vmul.f32 %v754_v29, %v452_v24 }
 0x17c   : > { %v420_v8 = vsel %vm419_vm6, %v416_v34, %v418_v6  ;;  %v414_v13 = vadd.f32 %v412_v3, %v391_v7  ;;  %v520_v61 = vpop.permute.xlu0 %519 }
 0x17d   : > { %v425_v11 = vsel %vm770_vm8, %v420_v8, 0.0 }
 0x17e   : > { %v431_v14 = vmul.f32 %v428_v26, %v425_v11  ;;  %v457_v26 = vmul.f32 %v754_v29, %v451_v22 }
 0x17f   : > { %v498_v16 = vpop.permute.xlu1 %497 }
 0x180   : > { %v433_v18 = vadd.f32 %v431_v14, %v414_v13  ;;  %v459_v43 = vadd.f32 %v457_v26, %v440_v30 }
 0x182   : > { %v441_v33 = vadd.f32 %v439_v23, %v433_v18 }
 0x183   : > { %v464_v31 = vpop.permute.xlu1 %463 }
 0x184   : > { %v466_v34 = vsel %vm465_vm11, %v462_v57, %v464_v31  ;;  %v469_v35 = vsel %vm465_vm11, %v464_v31, 0.0  ;;  %v460_v44 = vadd.f32 %v458_v38, %v441_v33 }
 0x185   : > { %v470_v36 = vsel %vm758_vm5, %v466_v34, 0.0  ;;  %v471_v37 = vsel %vm770_vm8, %v469_v35, 0.0 }
 0x186   : > { %v476_v28 = vmul.f32 %v756_v32, %v470_v36  ;;  %v477_v39 = vmul.f32 %v756_v32, %v471_v37 }
 0x187   : > { %v483_v41 = vpop.permute.xlu1 %482 }
 0x188   : > { %v485_v46 = vsel %vm484_vm12, %v481_v40, %v483_v41  ;;  %v488_v47 = vsel %vm484_vm12, %v483_v41, 0.0  ;;  %v478_v48 = vadd.f32 %v476_v28, %v459_v43  ;;  %v479_v42 = vadd.f32 %v477_v39, %v460_v44 }
 0x189   : > { %v493_v49 = vmul.f32 %v748_v25, %v485_v46  ;;  %v494_v50 = vmul.f32 %v748_v25, %v488_v47 }
 0x18b   : > { %v500_v51 = vpop.permute.xlu1 %499  ;;  %v495_v54 = vadd.f32 %v493_v49, %v478_v48  ;;  %v496_v55 = vadd.f32 %v494_v50, %v479_v42 }
 0x18c   : > { %v502_v29 = vsel %vm501_vm13, %v498_v16, %v500_v51  ;;  %v505_v52 = vsel %vm501_vm13, %v500_v51, 0.0 }
 0x18d   : > { %v506_v32 = vsel %vm763_vm7, %v502_v29, 0.0  ;;  %v507_v53 = vsel %vm780_vm9, %v505_v52, 0.0 }
 0x18e   : > { %v512_v56 = vmul.f32 %v750_v27, %v506_v32  ;;  %v513_v57 = vmul.f32 %v750_v27, %v507_v53 }
 0x190   : > { %v514_v58 = vadd.f32 %v512_v56, %v495_v54  ;;  %v515_v59 = vadd.f32 %v513_v57, %v496_v55 }
 0x192   : > { %v522_v62 = vadd.f32 %v520_v61, %v514_v58  ;;  %v523_v25 = vadd.f32 %v520_v61, %v515_v59 }
 0x194   : > { %v524_v63 = vmax.f32 %v522_v62, 0.0  ;;  %v525_v0 = vmax.f32 %v523_v25, 0.0 }
 0x196   : > { %v528_v45 = vrot.slane %v524_v63, 4  ;;  %v529_v60 = vrot.slane %v525_v0, 4 }
 0x198   : > { %v532_v1 = vsel %vm239_vm0, %v725_v19, %v528_v45  ;;  %v533_v27 = vsel %vm239_vm0, %v731_v21, %v529_v60 }
 0x199   : > { %534 = vst [vmem:[%s224_s20] sm:$0x7f] %v532_v1  ;;  %535 = vst [vmem:[%s224_s20 + $0x8] sm:$0x7f] %v533_v27 }
 0x19a PF: > { %s15_s18 = sadd.s32 1, %s650_s18  }
 0x19b   : > { %p12_p4 = scmp.ge.s32.totalorder %s15_s18, 4  }
 0x19d   :  { %14 = sbr.rel (!%p12_p4) target bundleno = 1 (0x1), region = 70 }

</bundles_post_ra>
